<compile_context>
chip_gen: v5e
topology: v5e:2x2
jax: 0.10.0
libtpu: 0.0.40
codegen_flags: <defaults>
</compile_context>

<pallas_src>
import math

import jax
import jax.numpy as jnp
from jax.experimental import pallas as pl
from jax.experimental.pallas import tpu as pltpu


def _round_up(x, m):
    return ((x + m - 1) // m) * m


def _vmem_caps():
    """Returns (vmem_limit_bytes for CompilerParams, usage budget for tiling)."""
    cap = 64 * 1024 * 1024                       # v7x floor (v5e/v6e have 128 MiB)
    try:
        cap = int(pltpu.get_tpu_info().vmem_capacity_bytes)
    except Exception:
        pass
    cap = min(max(cap, 32 * 1024 * 1024), 128 * 1024 * 1024)
    limit = min(cap * 7 // 8, 112 * 1024 * 1024)
    budget = int(limit * 0.75)                   # headroom for alignment/metadata
    return limit, budget


def _pick_tiles(n, c_pad, budget):
    """Row tile tm, neighbor tile tk (tk % tm == 0), padded extents."""
    n8 = _round_up(n, 8)

    def fits(tm_, tk_):
        mask = 2 * tm_ * tk_                     # int8 tile, double-buffered
        msgs = 2 * tk_ * c_pad * 2               # bf16 (x2 even when resident)
        rowb = 4 * tm_ * c_pad * 4               # root + out tiles, f32, dbl-buf
        return mask + msgs + rowb + (1 << 18) <= budget

    # Row tile: large (amortize ~0.35us/step overhead) but keep >= 2 row tiles
    # for mid-size graphs so v7x's second TensorCore isn't idled.
    if n8 <= 512:
        tm = n8                                  # tiny graph: single row tile
    elif n8 <= 2048:
        tm = 256
    else:
        tm = 512

    # Preferred: one neighbor tile spanning the whole padded graph
    # -> msgs fully VMEM-resident, no k loop, no msgs re-reads, n_rows == n_cols.
    for tm_try in (tm, 256, 128):
        if tm_try > n8:
            continue
        tk_full = _round_up(n, tm_try)
        if fits(tm_try, tk_full):
            return tm_try, tk_full, tk_full, tk_full

    # Fallback (huge graphs): tiled neighbor axis, f32 accumulation into the
    # resident output block.
    # TODO(synk): for this path, keep msgs VMEM-resident when it fits by using
    # a constant-index BlockSpec plus an in-kernel pl.ds(k*tk, tk) slice.
    for tk in (4096, 2048, 1024, 512):
        if tk % tm == 0 and fits(tm, tk):
            return tm, tk, _round_up(n, tm), _round_up(n, tk)
    tk = tm                                      # last resort: smallest legal
    return tm, tk, _round_up(n, tm), _round_up(n, tk)


# ---------------------------------------------------------------------------
# Kernels
# ---------------------------------------------------------------------------

def _proj_kernel(x_ref, wcat_ref, msgs_ref, root_ref):
    # Fused tiny-K matmul:  x @ [W_node | W_root]  (once per row tile).
    proj = jnp.dot(x_ref[...], wcat_ref[...], preferred_element_type=jnp.float32)
    c = msgs_ref.shape[-1]
    msgs_ref[...] = proj[:, :c].astype(msgs_ref.dtype)   # bf16 feed for MXU agg
    root_ref[...] = proj[:, c:]                          # exact f32


def _make_agg_kernel(has_bias):
    def kernel(mask_ref, msgs_ref, root_ref, *rest):
        if has_bias:
            bias_ref, o_ref = rest
        else:
            (o_ref,) = rest
        k = pl.program_id(1)

        @pl.when(k == 0)
        def _():
            init = root_ref[...]
            if has_bias:
                init = init + bias_ref[...]
            o_ref[...] = init

        # TODO(synk): for block-structured / very sparse masks, drive the
        # mask/msgs index_maps with a prefetched per-row-tile list of nonzero
        # k-tiles (PrefetchScalarGridSpec) so zero tiles are never DMA'd.
        # int8 -> bf16 cast on the VPU (free under the mem-bound regime),
        # f32 accumulation directly into the k-resident output block.
        o_ref[...] += jnp.dot(mask_ref[...].astype(jnp.bfloat16), msgs_ref[...],
                              preferred_element_type=jnp.float32)

    return kernel


# ---------------------------------------------------------------------------
# Wrapper
# ---------------------------------------------------------------------------

def sparse_node_conv(node_attr, node_mask, node_weight, root_weight, bias=None,
                     *, vmem_budget_bytes=None):
    """Pallas implementation of SparseNodeConv.forward (dense-mask semantics)."""
    n, c_in = node_attr.shape
    c_out = node_weight.shape[1]
    # Lane-pad to 128 (dense vst; fills v5e's 128-wide MXU result, half-width
    # on v6e/v7x which is fine while the kernel is HBM-bound on the mask).
    c_pad = _round_up(c_out, 128)

    vmem_limit, budget = _vmem_caps()
    if vmem_budget_bytes is not None:
        budget = vmem_budget_bytes
    tm, tk, n_rows, n_cols = _pick_tiles(n, c_pad, budget)

    # ---- projection: msgs = x @ W_node, root = x @ W_root (fused, hoisted) ----
    x_pad = jnp.pad(node_attr.astype(jnp.float32), ((0, n_cols - n), (0, 0)))
    w_cat = jnp.concatenate(
        [jnp.pad(node_weight.astype(jnp.float32), ((0, 0), (0, c_pad - c_out))),
         jnp.pad(root_weight.astype(jnp.float32), ((0, 0), (0, c_pad - c_out)))],
        axis=1)                                            # [c_in, 2*c_pad]

    msgs, root_full = pl.pallas_call(
        _proj_kernel,
        out_shape=(jax.ShapeDtypeStruct((n_cols, c_pad), jnp.bfloat16),
                   jax.ShapeDtypeStruct((n_cols, c_pad), jnp.float32)),
        grid_spec=pltpu.PrefetchScalarGridSpec(
            num_scalar_prefetch=0,
            grid=(n_cols // tm,),
            in_specs=[pl.BlockSpec((tm, c_in), lambda i: (i, 0)),
                      pl.BlockSpec((c_in, 2 * c_pad), lambda i: (0, 0))],
            out_specs=(pl.BlockSpec((tm, c_pad), lambda i: (i, 0)),
                       pl.BlockSpec((tm, c_pad), lambda i: (i, 0)))),
        compiler_params=pltpu.CompilerParams(
            dimension_semantics=("parallel",), vmem_limit_bytes=vmem_limit),
    )(x_pad, w_cat)
    # Preferred path has n_rows == n_cols, so no slice-copy; the fallback slice
    # is only O(N * c_pad * 4B), negligible vs the O(N^2) mask.
    root = root_full if n_rows == n_cols else root_full[:n_rows]

    # ---- aggregation: out = mask @ msgs + root (+ bias) ----
    # Keep the O(N^2) operand narrow in HBM: 0/1 masks as int8 (1 B/elem),
    # float (weighted) adjacencies as bf16.
    if jnp.issubdtype(node_mask.dtype, jnp.floating):
        mask_feed = node_mask.astype(jnp.bfloat16)
    else:
        mask_feed = node_mask.astype(jnp.int8)
    mask_pad = jnp.pad(mask_feed, ((0, n_rows - n), (0, n_cols - n)))

    has_bias = bias is not None
    in_specs = [pl.BlockSpec((tm, tk), lambda i, k: (i, k)),      # mask tile
                pl.BlockSpec((tk, c_pad), lambda i, k: (k, 0)),   # msgs (resident
                                                                  # when tk==n_cols)
                pl.BlockSpec((tm, c_pad), lambda i, k: (i, 0))]   # root tile
    args = [mask_pad, msgs, root]
    if has_bias:
        bias_pad = jnp.pad(bias.astype(jnp.float32),
                           (0, c_pad - c_out)).reshape(1, c_pad)
        in_specs.append(pl.BlockSpec((1, c_pad), lambda i, k: (0, 0)))
        args.append(bias_pad)

    out_pad = pl.pallas_call(
        _make_agg_kernel(has_bias),
        out_shape=jax.ShapeDtypeStruct((n_rows, c_pad), jnp.float32),
        grid_spec=pltpu.PrefetchScalarGridSpec(
            num_scalar_prefetch=0,
            grid=(n_rows // tm, n_cols // tk),
            in_specs=in_specs,
            out_specs=pl.BlockSpec((tm, c_pad), lambda i, k: (i, 0))),
        compiler_params=pltpu.CompilerParams(
            dimension_semantics=("parallel", "arbitrary"),
            vmem_limit_bytes=vmem_limit),
    )(*args)

    return out_pad[:n, :c_out]


# ---------------------------------------------------------------------------
# Init + demo / correctness check
# ---------------------------------------------------------------------------

def init_params(key, in_channels, out_channels, bias=True):
    """Matches reset_parameters(): U(-1/sqrt(out), 1/sqrt(out))."""
    stdv = 1.0 / math.sqrt(out_channels)
    k1, k2, k3 = jax.random.split(key, 3)
    node_weight = jax.random.uniform(
        k1, (in_channels, out_channels), jnp.float32, -stdv, stdv)
    root_weight = jax.random.uniform(
        k2, (in_channels, out_channels), jnp.float32, -stdv, stdv)
    b = (jax.random.uniform(k3, (out_channels,), jnp.float32, -stdv, stdv)
         if bias else None)
    return node_weight, root_weight, b


def _reference(node_attr, node_mask, node_weight, root_weight, bias):
    out = node_mask @ (node_attr @ node_weight) + node_attr @ root_weight
    if bias is not None:
        out = out + bias
    return out


if __name__ == "__main__":
    key = jax.random.PRNGKey(0)

    # Small shapes consistent with the module (C_in=4, C_out=32):
    #  - 8 nodes : tiny single-tile path
    #  - 640     : multi row-tile, msgs-resident single-k path
    #  - 640 + forced-small VMEM budget : exercises the tiled-k accumulation
    cases = [(8, 4, 32, None), (640, 4, 32, None), (640, 4, 32, 1 << 19)]
    for n_nodes, c_in, c_out, forced_budget in cases:
        key, k_x, k_m, k_p = jax.random.split(key, 4)
        node_attr = jax.random.normal(k_x, (n_nodes, c_in), jnp.float32)
        node_mask = (jax.random.uniform(k_m, (n_nodes, n_nodes)) < 0.3
                     ).astype(jnp.int8)                    # 0/1 mask, 1 B/elem
        node_weight, root_weight, bias = init_params(k_p, c_in, c_out, bias=True)

        out = sparse_node_conv(node_attr, node_mask, node_weight, root_weight,
                               bias, vmem_budget_bytes=forced_budget)
        out = jax.block_until_ready(out)

        ref = _reference(node_attr, node_mask.astype(jnp.float32),
                         node_weight, root_weight, bias)
        assert out.shape == (n_nodes, c_out)
        # msgs travel in bf16 for the MXU aggregation -> loosened tolerance.
        assert jnp.allclose(out, ref, rtol=2e-2, atol=5e-2), \
            f"mismatch vs reference at N={n_nodes}, budget={forced_budget}"

    print("KERNEL_OK")
</pallas_src>

<mosaic_0001>
module attributes {stable_mosaic.version = 11 : i64} {
  func.func @_proj_kernel(%arg0: i32, %arg1: memref<8x4xf32, #tpu.memory_space<vmem>>, %arg2: memref<4x256xf32, #tpu.memory_space<vmem>>, %arg3: memref<8x128xbf16, #tpu.memory_space<vmem>>, %arg4: memref<8x128xf32, #tpu.memory_space<vmem>>) attributes {dimension_semantics = [#tpu.dimension_semantics<parallel>], iteration_bounds = array<i64: 1>, scalar_prefetch = 0 : i64, scratch_operands = 0 : i64, tpu.core_type = #tpu.core_type<tc>, window_params = [{transform_indices = @transform_0, window_bounds = array<i64: 8, 4>}, {pipeline_mode = #tpu.pipeline_mode<synchronous>, transform_indices = @transform_1, window_bounds = array<i64: 4, 256>}, {transform_indices = @transform_2, window_bounds = array<i64: 8, 128>}, {transform_indices = @transform_3, window_bounds = array<i64: 8, 128>}]} {
    %c0 = arith.constant 0 : index
    %c0_0 = arith.constant 0 : index
    %0 = vector.load %arg1[%c0, %c0_0] : memref<8x4xf32, #tpu.memory_space<vmem>>, vector<8x4xf32>
    %c0_1 = arith.constant 0 : index
    %c0_2 = arith.constant 0 : index
    %1 = vector.load %arg2[%c0_1, %c0_2] : memref<4x256xf32, #tpu.memory_space<vmem>>, vector<4x256xf32>
    %cst = arith.constant dense<0.000000e+00> : vector<8x256xf32>
    %2 = tpu.matmul %0, %1, %cst {dimension_numbers = #tpu.dot_dimension_numbers<[1], [0], [0], [1], [0, 0, 1, 1], [], []>} : vector<8x4xf32>, vector<4x256xf32>, vector<8x256xf32> -> vector<8x256xf32>
    %3 = vector.extract_strided_slice %2 {offsets = [0, 0], sizes = [8, 128], strides = [1, 1]} : vector<8x256xf32> to vector<8x128xf32>
    %4 = arith.truncf %3 : vector<8x128xf32> to vector<8x128xbf16>
    %c0_3 = arith.constant 0 : index
    %c0_4 = arith.constant 0 : index
    %5 = vector.load %arg3[%c0_3, %c0_4] : memref<8x128xbf16, #tpu.memory_space<vmem>>, vector<8x128xbf16>
    tpu.vector_store %arg3[%c0_3, %c0_4], %4 {strides = array<i32>} : memref<8x128xbf16, #tpu.memory_space<vmem>>, vector<8x128xbf16>,
    %6 = vector.extract_strided_slice %2 {offsets = [0, 128], sizes = [8, 128], strides = [1, 1]} : vector<8x256xf32> to vector<8x128xf32>
    %c0_5 = arith.constant 0 : index
    %c0_6 = arith.constant 0 : index
    %7 = vector.load %arg4[%c0_5, %c0_6] : memref<8x128xf32, #tpu.memory_space<vmem>>, vector<8x128xf32>
    tpu.vector_store %arg4[%c0_5, %c0_6], %6 {strides = array<i32>} : memref<8x128xf32, #tpu.memory_space<vmem>>, vector<8x128xf32>,
    return
  }
  func.func @transform_0(%arg0: i32) -> (i32, i32) {
    %c0_i32 = arith.constant 0 : i32
    %c0_i32_0 = arith.constant 0 : i32
    return %arg0, %c0_i32 : i32, i32
  }
  func.func @transform_1(%arg0: i32) -> (i32, i32) {
    %c0_i32 = arith.constant 0 : i32
    %c0_i32_0 = arith.constant 0 : i32
    %c0_i32_1 = arith.constant 0 : i32
    return %c0_i32, %c0_i32_0 : i32, i32
  }
  func.func @transform_2(%arg0: i32) -> (i32, i32) {
    %c0_i32 = arith.constant 0 : i32
    %c0_i32_0 = arith.constant 0 : i32
    return %arg0, %c0_i32 : i32, i32
  }
  func.func @transform_3(%arg0: i32) -> (i32, i32) {
    %c0_i32 = arith.constant 0 : i32
    %c0_i32_0 = arith.constant 0 : i32
    return %arg0, %c0_i32 : i32, i32
  }
}

</mosaic_0001>

<bundles_post_ra>
// kernel: tpu_custom_call.1
= control target key start
LH: loop header
LB: loop body
LE: loop exit
PB: predicated region body
PF: predicated region fallthrough
CT: control target
= control target key end

     0   :  { %9 = vsyncpa [#allocation3], 0  ;;  %s197_s0 = inlined_call_operand.vmem [shape: f32[8,4], index: 0, kind: input, shape index: {}]   ;;  %s198_s1 = inlined_call_operand.vmem [shape: f32[4,256], index: 1, kind: input, shape index: {}]   ;;  %s199_s2 = inlined_call_operand.hbm [shape: bf16[8,128], index: 2, kind: output, shape index: {0}]   ;;  %s200_s3 = inlined_call_operand.hbm [shape: f32[8,128], index: 3, kind: output, shape index: {1}]  }
   0x1   :  { %v16_v0 = vld [vmem:[%s198_s1] sm:$0xff] }
   0x2   :  { %10 = vsyncpa [#allocation5], 0  ;;  %18 = vst [vmem:[#allocation1] ss:$2 sm:$0xff] %v16_v0  ;;  %vm25_vm0 = vcmask 1043456   ;;  %v15_v1 = vld [vmem:[%s197_s0] sm:$0xff] }
   0x3   :  { %vm21_vm1 = vcmask 31744   ;;  %s163_s16 = smov [#allocation4]   ;;  %s91_s1 = sshll.u32 %s200_s3, 4  ;;  %s92_s1 = int_to_ptr.hbm [resolvable:$true] %s91_s1 }
   0x4   :  { %s89_s17 = sshll.u32 %s163_s16, 4  ;;  %s164_s20 = smov [#allocation2]   ;;  %s90_s17 = int_to_ptr.vmem [resolvable:$true] %s89_s17 }
   0x5   :  { %s78_s21 = sshll.u32 %s164_s20, 4  ;;  %s80_s24 = sshll.u32 %s199_s2, 4  ;;  %s79_s21 = int_to_ptr.vmem [resolvable:$true] %s78_s21  ;;  %s81_s24 = int_to_ptr.hbm [resolvable:$true] %s80_s24 }
   0x9   :  { %v19_v2 = vld.sshfl [vmem:[#allocation1] sm:$0xff pattern:$0x75316420]  ;;  %v20_v3 = vld.sshfl [vmem:[#allocation1 + $0x8] sm:$0xff pattern:$0x75316420] }
   0xa   :  { %105 = vmatpush.msk.msra.mxu0 %vm25_vm0, %v19_v2  ;;  %107 = vmatpush.msk.msra.mxu1 %vm25_vm0, %v20_v3 }
   0xb   :  { %106 = vmatmul.msk.f32.vlgmr.msra.gmra.mxu0 %vm21_vm1, %v15_v1  ;;  %108 = vmatmul.msk.f32.vlgmr.msra.gmra.mxu1 %vm21_vm1, %v15_v1 }
  0x88   :  { %v47_v4 = vpop.f32.mrf.mxu0  ;;  %v67_v5 = vpop.f32.mrf.mxu1 }
  0x89   :  { %v70_v6 = vpack.c.bf16 %v47_v4, %v47_v4  ;;  %72 = vst [vmem:[#allocation4] sm:$0xff] %v67_v5 }
  0x8a   :  { %94 = dma.vmem_to_hbm [thread:$0]  %s90_s17, 128, %s92_s1, [#allocation5]  }
  0x8b   :  { %71 = vst [vmem:[#allocation2] sm:$0xf] %v70_v6 }
  0x8c   :  { %83 = dma.vmem_to_hbm [thread:$0]  %s79_s21, 64, %s81_s24, [#allocation3]  }
  0x8d   :  { %159 = dma.done.wait [#allocation3], 64  }
  0x8e   :  { %160 = vsyncadd [#allocation3], 4294967232 }
  0x8f   :  { %161 = dma.done.wait [#allocation5], 128  }
  0x90   :  { %162 = vsyncadd [#allocation5], 4294967168 }
  0x91   :  { %103 = vsyncpa [#allocation3], 1 }
  0x92   :  { %104 = vsyncpa [#allocation5], 1 }

</bundles_post_ra>
